<compile_context>
chip_gen: v7x
topology: tpu7x:2x2x1
jax: 0.10.0
libtpu: 0.0.40
codegen_flags: <defaults>
</compile_context>

<pallas_src>
import functools

import numpy as np
import jax
import jax.numpy as jnp
from jax.experimental import pallas as pl
from jax.experimental.pallas import tpu as pltpu


def conv_out(h_in, padding, kernel_size, stride):
    return int((h_in + 2.0 * padding - (kernel_size - 1.0) - 1.0) / stride + 1.0)


def _round_up(x, m):
    return ((x + m - 1) // m) * m


# ----------------------------- Pallas kernel --------------------------------
def _encoder_kernel(x_ref, b1_ref, *refs, relu_last):
    """One grid step processes a (B, F0) slab of flattened batch elements.

    x_ref   : (B, F0)    channel-major flattened observations (bf16)
    b1_ref  : (1, P1)    layer-1 bias (f32, incl. ones-column seed, zero-padded)
    refs    : W1..Wlast (bf16, biases folded via ones column, widths padded to
              multiples of 128) followed by out_ref (bf16, lane-dense)
    """
    *w_refs, out_ref = refs
    cdt = x_ref.dtype  # bf16 compute dtype for MXU operands

    # Layer 1: conv as one matmul (f32 acc), explicit f32 bias add, ReLU.
    h = jnp.dot(x_ref[...], w_refs[0][...], preferred_element_type=jnp.float32)
    h = jnp.maximum(h + b1_ref[...], 0.0)

    # Remaining layers: biases folded into the weights (ones column).
    n_rest = len(w_refs) - 1
    for i, w_ref in enumerate(w_refs[1:]):
        h = jnp.dot(h.astype(cdt), w_ref[...],
                    preferred_element_type=jnp.float32)
        if (i < n_rest - 1) or relu_last:
            h = jnp.maximum(h, 0.0)

    out_ref[...] = h.astype(out_ref.dtype)


# --------------------- wrapper-side weight preparation ------------------------
def _conv_matrix(w, lin):
    """Torch Conv1d weight (Cout, Cin, k) -> dense (Cin*Lin, Cout*Lout) matrix.

    Implements valid, stride-1 conv on channel-major flattened vectors:
      out[o*Lout + l] = sum_{c,t} in[c*Lin + l + t] * w[o, c, t]
    """
    cout, cin, k = w.shape
    lout = lin - k + 1
    t = np.arange(lin)[:, None] - np.arange(lout)[None, :]        # (Lin, Lout)
    valid = jnp.asarray((t >= 0) & (t < k))
    tc = np.clip(t, 0, k - 1)
    m = jnp.asarray(w, jnp.float32)[:, :, tc]                     # (Cout, Cin, Lin, Lout)
    m = jnp.where(valid[None, None], m, 0.0)
    m = jnp.transpose(m, (1, 2, 0, 3))                            # (Cin, Lin, Cout, Lout)
    return m.reshape(cin * lin, cout * lout)


def _stack_with_bias_row(core, bias_vec, *, ones_col):
    """Append a bias row (consumed by the previous layer's ones column); if
    ones_col, also append an all-zero column whose bias entry is 1 so the ones
    column propagates through ReLU to the next layer."""
    core = core.astype(jnp.float32)
    bias_vec = bias_vec.astype(jnp.float32)
    if ones_col:
        core = jnp.concatenate(
            [core, jnp.zeros((core.shape[0], 1), jnp.float32)], axis=1)
        bias_vec = jnp.concatenate([bias_vec, jnp.ones((1,), jnp.float32)])
    return jnp.concatenate([core, bias_vec[None, :]], axis=0)


def _pad_to(mat, rows, cols):
    r, c = mat.shape
    return jnp.pad(mat, ((0, rows - r), (0, cols - c)))


def prepare_obs_encoder(params, k, input_shape, *, compute_dtype=jnp.bfloat16):
    """Pack the encoder parameters once (hoisted out of the per-call path)."""
    c_in, L = input_shape
    d = params["w1"].shape[0]
    L1 = L - k + 1
    L2 = L1 - k + 1
    L3 = L2 - k + 1
    embed_size = 4 * d * L3
    f0 = c_in * L

    core1 = _conv_matrix(params["w1"], L)      # (c_in*L , d*L1)
    core2 = _conv_matrix(params["w2"], L1)     # (d*L1   , 2d*L2)
    core3 = _conv_matrix(params["w3"], L2)     # (2d*L2  , 4d*L3)

    # Padded (lane-aligned) widths of each intermediate (incl. ones column).
    p1 = _round_up(d * L1 + 1, 128)
    p2 = _round_up(2 * d * L2 + 1, 128)

    # Layer 1: explicit (tiny, f32) bias operand; extra zero-weight column with
    # bias 1 seeds the ones column used by all downstream bias folds.
    w1 = jnp.concatenate([core1, jnp.zeros((f0, 1), jnp.float32)], axis=1)
    w1 = _pad_to(w1, f0, p1)
    b1 = jnp.concatenate(
        [jnp.repeat(params["b1"].astype(jnp.float32), L1),
         jnp.ones((1,), jnp.float32)])
    b1 = jnp.pad(b1, (0, p1 - b1.shape[0]))[None, :]              # (1, p1) f32

    w2 = _stack_with_bias_row(
        core2, jnp.repeat(params["b2"].astype(jnp.float32), L2), ones_col=True)
    w2 = _pad_to(w2, p1, p2)

    identity_fc = params.get("wfc", None) is None
    if identity_fc:
        # fc_1 == nn.Identity(): third matmul writes the output directly
        # (already in PyTorch channel-major flatten order).
        p3 = _round_up(embed_size, 128)
        w3 = _stack_with_bias_row(
            core3, jnp.repeat(params["b3"].astype(jnp.float32), L3),
            ones_col=False)
        w3 = _pad_to(w3, p2, p3)
        weights = [w1, w2, w3]
        e_real, e_pad = embed_size, p3
        relu_last = True
    else:
        p3 = _round_up(embed_size + 1, 128)
        w3 = _stack_with_bias_row(
            core3, jnp.repeat(params["b3"].astype(jnp.float32), L3),
            ones_col=True)
        w3 = _pad_to(w3, p2, p3)
        wfc = params["wfc"].astype(jnp.float32)
        bfc = params["bfc"].astype(jnp.float32)
        e_real = wfc.shape[0]
        e_pad = _round_up(e_real, 128)
        wfck = _pad_to(_stack_with_bias_row(wfc.T, bfc, ones_col=False),
                       p3, e_pad)
        weights = [w1, w2, w3, wfck]
        relu_last = False

    weights = [w.astype(compute_dtype) for w in weights]
    return {
        "weights": weights,
        "b1": b1,                       # stays f32 (added on the f32 acc)
        "relu_last": relu_last,
        "f0": f0,
        "e_real": e_real,
        "e_pad": e_pad,
        "compute_dtype": compute_dtype,
    }


# ------------------------------- wrapper -------------------------------------
def obs_encoder_forward(obs, packed, *, batch_tile=2048):
    """obs: (*batch_shape, C_in, L) in PyTorch NCL layout."""
    batch_shape = obs.shape[:-2]
    c_in, L = obs.shape[-2:]
    f0 = packed["f0"]
    assert c_in * L == f0, (c_in, L, f0)
    weights = packed["weights"]
    b1 = packed["b1"]
    e_real, e_pad = packed["e_real"], packed["e_pad"]
    cdt = packed["compute_dtype"]

    # Channel-major flatten (c*L + l) is the native row-major order -> free.
    x = obs.reshape((-1, f0)).astype(cdt)
    n = x.shape[0]

    # Batch tiling: big M per grid step, MXU/lane aligned; tiny batches round
    # up to 8 sublanes.  For large single-tile batches split into >=2 grid
    # steps so the parallel axis can shard across both v7x TensorCores.
    bt = min(batch_tile, _round_up(max(n, 1), 8))
    if n >= 1024 and n <= bt:
        bt2 = _round_up(pl.cdiv(n, 2), 256)
        if 2 * bt2 - n <= n // 4:       # cap zero-padding waste
            bt = bt2
    n_pad = _round_up(n, bt)
    if n_pad != n:
        x = jnp.pad(x, ((0, n_pad - n), (0, 0)))

    kernel = functools.partial(_encoder_kernel, relu_last=packed["relu_last"])
    in_specs = [pl.BlockSpec((bt, f0), lambda i: (i, 0)),
                pl.BlockSpec(b1.shape, lambda i: (0, 0))]
    in_specs += [pl.BlockSpec(w.shape, lambda i: (0, 0)) for w in weights]

    dtype_size = jnp.dtype(cdt).itemsize
    flops = 2 * n_pad * sum(int(w.shape[0]) * int(w.shape[1]) for w in weights)
    bytes_accessed = (n_pad * (f0 + e_pad) * dtype_size
                      + sum(int(w.size) for w in weights) * dtype_size
                      + int(b1.size) * 4)

    out = pl.pallas_call(
        kernel,
        out_shape=jax.ShapeDtypeStruct((n_pad, e_pad), cdt),
        grid=(n_pad // bt,),
        in_specs=in_specs,
        out_specs=pl.BlockSpec((bt, e_pad), lambda i: (i, 0)),
        compiler_params=pltpu.CompilerParams(
            dimension_semantics=("parallel",),
            vmem_limit_bytes=32 * 1024 * 1024),
        cost_estimate=pl.CostEstimate(
            flops=flops, transcendentals=0, bytes_accessed=bytes_accessed),
    )(x, b1, *weights)

    out = out[:n, :e_real].astype(jnp.float32)
    return out.reshape(*batch_shape, e_real)


# --------------------------- pure-JAX reference -------------------------------
def ref_forward(obs, params, k):
    batch_shape = obs.shape[:-2]
    x = obs.reshape((-1,) + obs.shape[-2:]).astype(jnp.float32)   # (N, C, L)

    def conv(x, w, b):  # x (N,Ci,L), w (Co,Ci,k), b (Co,)
        Lo = x.shape[2] - k + 1
        y = jnp.zeros((x.shape[0], w.shape[0], Lo), jnp.float32)
        for t in range(k):
            y = y + jnp.einsum("ncl,oc->nol", x[:, :, t:t + Lo], w[:, :, t])
        return jax.nn.relu(y + b[None, :, None])

    h = conv(x, params["w1"], params["b1"])
    h = conv(h, params["w2"], params["b2"])
    h = conv(h, params["w3"], params["b3"])
    emb = h.reshape(x.shape[0], -1)                                # channel-major flatten
    if params["wfc"] is not None:
        emb = emb @ params["wfc"].T + params["bfc"]
    return emb.reshape(*batch_shape, -1)


# ---------------------------------- main --------------------------------------
if __name__ == "__main__":
    key = jax.random.PRNGKey(0)
    C_in, L = 4, 16                 # input_shape = (4, 16)
    k_size = 3                      # info['kernel']
    d = 8                           # info['depth']
    embedding_size = 32
    batch_shape = (2, 3)

    L1 = conv_out(L, 0, k_size, 1)
    L2 = conv_out(L1, 0, k_size, 1)
    L3 = conv_out(L2, 0, k_size, 1)
    embed_size = 4 * d * L3         # 320 != embedding_size -> fc_1 is Linear

    keys = jax.random.split(key, 11)

    def init(kk, shape, fan_in):
        return jax.random.normal(kk, shape, jnp.float32) / np.sqrt(fan_in)

    params = {
        "w1": init(keys[0], (d, C_in, k_size), C_in * k_size),
        "b1": init(keys[1], (d,), C_in * k_size),
        "w2": init(keys[2], (2 * d, d, k_size), d * k_size),
        "b2": init(keys[3], (2 * d,), d * k_size),
        "w3": init(keys[4], (4 * d, 2 * d, k_size), 2 * d * k_size),
        "b3": init(keys[5], (4 * d,), 2 * d * k_size),
        "wfc": init(keys[6], (embedding_size, embed_size), embed_size),
        "bfc": init(keys[7], (embedding_size,), embed_size),
    }

    obs = jax.random.normal(keys[8], batch_shape + (C_in, L), jnp.float32)

    # bf16 MXU operands with f32 accumulation -> looser end-to-end tolerance
    # against the pure-f32 reference.
    RTOL = ATOL = 5e-2

    # 1) Linear-fc path, small batch (weights packed once, reused below).
    packed = prepare_obs_encoder(params, k_size, (C_in, L))
    out = jax.block_until_ready(obs_encoder_forward(obs, packed))
    ref = ref_forward(obs, params, k_size)
    assert out.shape == batch_shape + (embedding_size,), out.shape
    np.testing.assert_allclose(np.asarray(out), np.asarray(ref),
                               rtol=RTOL, atol=ATOL)

    # 2) Identity-fc path (embedding_size == embed_size).
    params_id = dict(params, wfc=None, bfc=None)
    packed_id = prepare_obs_encoder(params_id, k_size, (C_in, L))
    out_id = jax.block_until_ready(obs_encoder_forward(obs, packed_id))
    ref_id = ref_forward(obs, params_id, k_size)
    assert out_id.shape == batch_shape + (embed_size,), out_id.shape
    np.testing.assert_allclose(np.asarray(out_id), np.asarray(ref_id),
                               rtol=RTOL, atol=ATOL)

    # 3) Larger batch exercising multi-step grid + batch padding.
    obs_big = jax.random.normal(keys[9], (600, C_in, L), jnp.float32)
    out_big = jax.block_until_ready(
        obs_encoder_forward(obs_big, packed, batch_tile=256))
    ref_big = ref_forward(obs_big, params, k_size)
    np.testing.assert_allclose(np.asarray(out_big), np.asarray(ref_big),
                               rtol=RTOL, atol=ATOL)

    # 4) Medium batch exercising the >=2-grid-step split (both v7x cores).
    obs_med = jax.random.normal(keys[10], (1500, C_in, L), jnp.float32)
    out_med = jax.block_until_ready(obs_encoder_forward(obs_med, packed))
    ref_med = ref_forward(obs_med, params, k_size)
    np.testing.assert_allclose(np.asarray(out_med), np.asarray(ref_med),
                               rtol=RTOL, atol=ATOL)

    print("KERNEL_OK")
</pallas_src>

<mosaic_0001>
module attributes {stable_mosaic.version = 11 : i64} {
  func.func @_encoder_kernel(%arg0: i32, %arg1: memref<8x64xbf16, #tpu.memory_space<vmem>>, %arg2: memref<1x128xf32, #tpu.memory_space<vmem>>, %arg3: memref<64x128xbf16, #tpu.memory_space<vmem>>, %arg4: memref<128x256xbf16, #tpu.memory_space<vmem>>, %arg5: memref<256x384xbf16, #tpu.memory_space<vmem>>, %arg6: memref<384x128xbf16, #tpu.memory_space<vmem>>, %arg7: memref<8x128xbf16, #tpu.memory_space<vmem>>) attributes {dimension_semantics = [#tpu.dimension_semantics<parallel>], iteration_bounds = array<i64: 1>, scalar_prefetch = 0 : i64, scratch_operands = 0 : i64, tpu.core_type = #tpu.core_type<tc>, window_params = [{transform_indices = @transform_0, window_bounds = array<i64: 8, 64>}, {pipeline_mode = #tpu.pipeline_mode<synchronous>, transform_indices = @transform_1, window_bounds = array<i64: 1, 128>}, {pipeline_mode = #tpu.pipeline_mode<synchronous>, transform_indices = @transform_2, window_bounds = array<i64: 64, 128>}, {pipeline_mode = #tpu.pipeline_mode<synchronous>, transform_indices = @transform_3, window_bounds = array<i64: 128, 256>}, {pipeline_mode = #tpu.pipeline_mode<synchronous>, transform_indices = @transform_4, window_bounds = array<i64: 256, 384>}, {pipeline_mode = #tpu.pipeline_mode<synchronous>, transform_indices = @transform_5, window_bounds = array<i64: 384, 128>}, {transform_indices = @transform_6, window_bounds = array<i64: 8, 128>}]} {
    %c0 = arith.constant 0 : index
    %c0_0 = arith.constant 0 : index
    %0 = vector.load %arg1[%c0, %c0_0] : memref<8x64xbf16, #tpu.memory_space<vmem>>, vector<8x64xbf16>
    %c0_1 = arith.constant 0 : index
    %c0_2 = arith.constant 0 : index
    %1 = vector.load %arg3[%c0_1, %c0_2] : memref<64x128xbf16, #tpu.memory_space<vmem>>, vector<64x128xbf16>
    %cst = arith.constant dense<0.000000e+00> : vector<8x128xf32>
    %2 = tpu.matmul %0, %1, %cst {dimension_numbers = #tpu.dot_dimension_numbers<[1], [0], [0], [1], [0, 0, 1, 1], [], []>} : vector<8x64xbf16>, vector<64x128xbf16>, vector<8x128xf32> -> vector<8x128xf32>
    %c0_3 = arith.constant 0 : index
    %c0_4 = arith.constant 0 : index
    %3 = vector.load %arg2[%c0_3, %c0_4] : memref<1x128xf32, #tpu.memory_space<vmem>>, vector<1x128xf32>
    %4 = vector.broadcast %3 : vector<1x128xf32> to vector<8x128xf32>
    %5 = arith.addf %2, %4 : vector<8x128xf32>
    %cst_5 = arith.constant 0.000000e+00 : f32
    %6 = vector.broadcast %cst_5 : f32 to vector<8x128xf32>
    %7 = arith.maximumf %5, %6 : vector<8x128xf32>
    %8 = arith.truncf %7 : vector<8x128xf32> to vector<8x128xbf16>
    %c0_6 = arith.constant 0 : index
    %c0_7 = arith.constant 0 : index
    %9 = vector.load %arg4[%c0_6, %c0_7] : memref<128x256xbf16, #tpu.memory_space<vmem>>, vector<128x256xbf16>
    %cst_8 = arith.constant dense<0.000000e+00> : vector<8x256xf32>
    %10 = tpu.matmul %8, %9, %cst_8 {dimension_numbers = #tpu.dot_dimension_numbers<[1], [0], [0], [1], [0, 0, 1, 1], [], []>} : vector<8x128xbf16>, vector<128x256xbf16>, vector<8x256xf32> -> vector<8x256xf32>
    %cst_9 = arith.constant 0.000000e+00 : f32
    %11 = vector.broadcast %cst_9 : f32 to vector<8x256xf32>
    %12 = arith.maximumf %10, %11 : vector<8x256xf32>
    %13 = arith.truncf %12 : vector<8x256xf32> to vector<8x256xbf16>
    %c0_10 = arith.constant 0 : index
    %c0_11 = arith.constant 0 : index
    %14 = vector.load %arg5[%c0_10, %c0_11] : memref<256x384xbf16, #tpu.memory_space<vmem>>, vector<256x384xbf16>
    %cst_12 = arith.constant dense<0.000000e+00> : vector<8x384xf32>
    %15 = tpu.matmul %13, %14, %cst_12 {dimension_numbers = #tpu.dot_dimension_numbers<[1], [0], [0], [1], [0, 0, 1, 1], [], []>} : vector<8x256xbf16>, vector<256x384xbf16>, vector<8x384xf32> -> vector<8x384xf32>
    %cst_13 = arith.constant 0.000000e+00 : f32
    %16 = vector.broadcast %cst_13 : f32 to vector<8x384xf32>
    %17 = arith.maximumf %15, %16 : vector<8x384xf32>
    %18 = arith.truncf %17 : vector<8x384xf32> to vector<8x384xbf16>
    %c0_14 = arith.constant 0 : index
    %c0_15 = arith.constant 0 : index
    %19 = vector.load %arg6[%c0_14, %c0_15] : memref<384x128xbf16, #tpu.memory_space<vmem>>, vector<384x128xbf16>
    %cst_16 = arith.constant dense<0.000000e+00> : vector<8x128xf32>
    %20 = tpu.matmul %18, %19, %cst_16 {dimension_numbers = #tpu.dot_dimension_numbers<[1], [0], [0], [1], [0, 0, 1, 1], [], []>} : vector<8x384xbf16>, vector<384x128xbf16>, vector<8x128xf32> -> vector<8x128xf32>
    %21 = arith.truncf %20 : vector<8x128xf32> to vector<8x128xbf16>
    %c0_17 = arith.constant 0 : index
    %c0_18 = arith.constant 0 : index
    %22 = vector.load %arg7[%c0_17, %c0_18] : memref<8x128xbf16, #tpu.memory_space<vmem>>, vector<8x128xbf16>
    tpu.vector_store %arg7[%c0_17, %c0_18], %21 {strides = array<i32>} : memref<8x128xbf16, #tpu.memory_space<vmem>>, vector<8x128xbf16>,
    return
  }
  func.func @transform_0(%arg0: i32) -> (i32, i32) {
    %c0_i32 = arith.constant 0 : i32
    %c0_i32_0 = arith.constant 0 : i32
    return %arg0, %c0_i32 : i32, i32
  }
  func.func @transform_1(%arg0: i32) -> (i32, i32) {
    %c0_i32 = arith.constant 0 : i32
    %c0_i32_0 = arith.constant 0 : i32
    %c0_i32_1 = arith.constant 0 : i32
    return %c0_i32, %c0_i32_0 : i32, i32
  }
  func.func @transform_2(%arg0: i32) -> (i32, i32) {
    %c0_i32 = arith.constant 0 : i32
    %c0_i32_0 = arith.constant 0 : i32
    %c0_i32_1 = arith.constant 0 : i32
    return %c0_i32, %c0_i32_0 : i32, i32
  }
  func.func @transform_3(%arg0: i32) -> (i32, i32) {
    %c0_i32 = arith.constant 0 : i32
    %c0_i32_0 = arith.constant 0 : i32
    %c0_i32_1 = arith.constant 0 : i32
    return %c0_i32, %c0_i32_0 : i32, i32
  }
  func.func @transform_4(%arg0: i32) -> (i32, i32) {
    %c0_i32 = arith.constant 0 : i32
    %c0_i32_0 = arith.constant 0 : i32
    %c0_i32_1 = arith.constant 0 : i32
    return %c0_i32, %c0_i32_0 : i32, i32
  }
  func.func @transform_5(%arg0: i32) -> (i32, i32) {
    %c0_i32 = arith.constant 0 : i32
    %c0_i32_0 = arith.constant 0 : i32
    %c0_i32_1 = arith.constant 0 : i32
    return %c0_i32, %c0_i32_0 : i32, i32
  }
  func.func @transform_6(%arg0: i32) -> (i32, i32) {
    %c0_i32 = arith.constant 0 : i32
    %c0_i32_0 = arith.constant 0 : i32
    return %arg0, %c0_i32 : i32, i32
  }
}

</mosaic_0001>

<bundles_post_ra>
// kernel: tpu_custom_call.1
= control target key start
LH: loop header
LB: loop body
LE: loop exit
PB: predicated region body
PF: predicated region fallthrough
CT: control target
= control target key end

     0   :  { %11 = vsyncpa [#allocation3], 0  ;;  %s1625_s0 = inlined_call_operand.hbm [shape: bf16[8,64], index: 0, kind: input, shape index: {}]   ;;  %s1626_s1 = inlined_call_operand.vmem [shape: f32[1,128], index: 1, kind: input, shape index: {}]   ;;  %s1627_s2 = inlined_call_operand.hbm [shape: bf16[64,128], index: 2, kind: input, shape index: {}]   ;;  %s1628_s3 = inlined_call_operand.hbm [shape: bf16[128,256], index: 3, kind: input, shape index: {}]   ;;  %s1629_s4 = inlined_call_operand.hbm [shape: bf16[256,384], index: 4, kind: input, shape index: {}]   ;;  %s1630_s5 = inlined_call_operand.hbm [shape: bf16[384,128], index: 5, kind: input, shape index: {}]   ;;  %s1631_s6 = inlined_call_operand.hbm [shape: bf16[8,128], index: 6, kind: output, shape index: {}]  }
   0x1   :  { %12 = vsyncpa [#allocation6], 0 }
   0x2   :  { %13 = vsyncpa [#allocation9], 0 }
   0x3   :  { %14 = vsyncpa [#allocation4], 0  ;;  %s1471_s21 = smov [#allocation5]   ;;  %s1331_s25 = scalar_lea.hbm %s1627_s2, 512 }
   0x4   :  { %s32_s22 = sshll.u32 %s1471_s21, 4  ;;  %p1332_p0 = scmp.ne.s32.totalorder %s1627_s2, %s1331_s25  ;;  %s33_s22 = int_to_ptr.vmem [resolvable:$true] %s32_s22 }
   0x5   :  { %p1335_p1 = scmp.lt.u32.totalorder %s1331_s25, %s1627_s2 }
   0x7   :  { %p1337_p2 = pnand %p1335_p1, %p1332_p0 }
   0x9   :  { %1340 = shalt.err (!%p1337_p2)
}
   0xa   :  { %s1341_s30 = scalar_lea.vmem %s33_s22, 512  ;;  %p1346_p4 = scmp.lt.s32.totalorder %s33_s22, %s33_s22 }
   0xb   :  { %p1342_p3 = scmp.ne.s32.totalorder %s33_s22, %s1341_s30  ;;  %p1347_p5 = scmp.lt.s32.totalorder %s1341_s30, %s1341_s30 }
   0xd   :  { %p1348_p6 = por %p1347_p5, %p1346_p4 }
   0xf   :  { %p1349_p7 = pnand %p1348_p6, %p1342_p3 }
  0x11   :  { %1352 = shalt.err (!%p1349_p7)
}
  0x12   :  { %s1472_s7 = smov 64   ;;  %s1473_s8 = smov 4  }
  0x13   :  { %38 = dma.hbm_to_vmem [thread:$0]  %s1627_s2, 512, %s33_s22, [#allocation6], %s1472_s7, %s1472_s7, %s1473_s8  }
  0x14   :  { %s1474_s11 = smov [#allocation8]   ;;  %s1353_s15 = scalar_lea.hbm %s1629_s4, 6144 }
  0x15   :  { %s56_s12 = sshll.u32 %s1474_s11, 4  ;;  %p1354_p8 = scmp.ne.s32.totalorder %s1629_s4, %s1353_s15  ;;  %s57_s12 = int_to_ptr.vmem [resolvable:$true] %s56_s12 }
  0x16   :  { %p1357_p9 = scmp.lt.u32.totalorder %s1353_s15, %s1629_s4 }
  0x18   :  { %p1359_p10 = pnand %p1357_p9, %p1354_p8 }
  0x1a   :  { %1362 = shalt.err (!%p1359_p10)
}
  0x1b   :  { %s1363_s20 = scalar_lea.vmem %s57_s12, 6144  ;;  %p1368_p12 = scmp.lt.s32.totalorder %s57_s12, %s57_s12 }
  0x1c   :  { %p1364_p11 = scmp.ne.s32.totalorder %s57_s12, %s1363_s20  ;;  %p1369_p13 = scmp.lt.s32.totalorder %s1363_s20, %s1363_s20 }
  0x1e   :  { %p1370_p0 = por %p1369_p13, %p1368_p12 }
  0x20   :  { %p1371_p1 = pnand %p1370_p0, %p1364_p11 }
  0x22   :  { %1374 = shalt.err (!%p1371_p1)
}
  0x23   :  { %s1475_s2 = smov 192   ;;  %s1476_s21 = smov 12  }
  0x24   :  { %62 = dma.hbm_to_vmem [thread:$0]  %s1629_s4, 6144, %s57_s12, [#allocation9], %s1475_s2, %s1475_s2, %s1476_s21  }
  0x25   :  { %s1477_s24 = smov [#allocation2]   ;;  %s1478_s26 = smov [#allocation7]  }
  0x26   :  { %s21_s25 = sshll.u32 %s1477_s24, 4  ;;  %s44_s27 = sshll.u32 %s1478_s26, 4  ;;  %s22_s25 = int_to_ptr.vmem [resolvable:$true] %s21_s25  ;;  %s1548_s27 = int_to_ptr.vmem [resolvable:$true] %s44_s27 }
  0x27   :  { %s1375_s30 = scalar_lea.hbm %s1625_s0, 64 }
  0x28   :  { %p1376_p2 = scmp.ne.s32.totalorder %s1625_s0, %s1375_s30  ;;  %p1379_p3 = scmp.lt.u32.totalorder %s1375_s30, %s1625_s0 }
  0x2a   :  { %p1381_p4 = pnand %p1379_p3, %p1376_p2 }
  0x2c   :  { %1384 = shalt.err (!%p1381_p4)
}
  0x2d   :  { %s1385_s4 = scalar_lea.vmem %s22_s25, 64  ;;  %p1390_p6 = scmp.lt.s32.totalorder %s22_s25, %s22_s25 }
  0x2e   :  { %p1386_p5 = scmp.ne.s32.totalorder %s22_s25, %s1385_s4  ;;  %p1391_p7 = scmp.lt.s32.totalorder %s1385_s4, %s1385_s4 }
  0x30   :  { %p1392_p8 = por %p1391_p7, %p1390_p6 }
  0x32   :  { %p1393_p9 = pnand %p1392_p8, %p1386_p5 }
  0x34   :  { %1396 = shalt.err (!%p1393_p9)
}
  0x35   :  { %24 = dma.hbm_to_vmem [thread:$0]  %s1625_s0, 64, %s22_s25, [#allocation3]  }
  0x36   :  { %s1397_s17 = scalar_lea.hbm %s1628_s3, 2048 }
  0x37   :  { %p1398_p10 = scmp.ne.s32.totalorder %s1628_s3, %s1397_s17  ;;  %p1401_p11 = scmp.lt.u32.totalorder %s1397_s17, %s1628_s3 }
  0x39   :  { %p1403_p12 = pnand %p1401_p11, %p1398_p10 }
  0x3b   :  { %1406 = shalt.err (!%p1403_p12)
}
  0x3c   :  { %s1407_s21 = scalar_lea.vmem %s1548_s27, 2048  ;;  %p1412_p0 = scmp.lt.s32.totalorder %s1548_s27, %s1548_s27 }
  0x3d   :  { %p1408_p13 = scmp.ne.s32.totalorder %s1548_s27, %s1407_s21  ;;  %p1413_p1 = scmp.lt.s32.totalorder %s1407_s21, %s1407_s21 }
  0x3f   :  { %p1414_p2 = por %p1413_p1, %p1412_p0 }
  0x41   :  { %p1415_p3 = pnand %p1414_p2, %p1408_p13 }
  0x43   :  { %1418 = shalt.err (!%p1415_p3)
}
  0x44   :  { %s1479_s0 = smov 128   ;;  %s1480_s22 = smov 8  }
  0x45   :  { %50 = dma.hbm_to_vmem [thread:$0]  %s1628_s3, 2048, %s1548_s27, [#allocation6], %s1479_s0, %s1479_s0, %s1480_s22  }
  0x46   :  { %s1481_s25 = smov [#allocation10]   ;;  %s1419_s30 = scalar_lea.hbm %s1630_s5, 3072 }
  0x47   :  { %s68_s26 = sshll.u32 %s1481_s25, 4  ;;  %p1420_p4 = scmp.ne.s32.totalorder %s1630_s5, %s1419_s30  ;;  %s69_s26 = int_to_ptr.vmem [resolvable:$true] %s68_s26 }
  0x48   :  { %p1423_p5 = scmp.lt.u32.totalorder %s1419_s30, %s1630_s5 }
  0x4a   :  { %p1425_p6 = pnand %p1423_p5, %p1420_p4 }
  0x4c   :  { %1428 = shalt.err (!%p1425_p6)
}
  0x4d   :  { %s1429_s4 = scalar_lea.vmem %s69_s26, 3072  ;;  %p1434_p8 = scmp.lt.s32.totalorder %s69_s26, %s69_s26 }
  0x4e   :  { %p1430_p7 = scmp.ne.s32.totalorder %s69_s26, %s1429_s4  ;;  %p1435_p9 = scmp.lt.s32.totalorder %s1429_s4, %s1429_s4 }
  0x50   :  { %p1436_p10 = por %p1435_p9, %p1434_p8 }
  0x52   :  { %p1437_p11 = pnand %p1436_p10, %p1430_p7 }
  0x54   :  { %1440 = shalt.err (!%p1437_p11)
}
  0x55   :  { %74 = dma.hbm_to_vmem [thread:$0]  %s1630_s5, 3072, %s69_s26, [#allocation9], %s1472_s7, %s1472_s7, %s1473_s8  }
  0x56   :  { %1463 = dma.done.wait [#allocation3], 64  }
  0x57   :  { %1464 = vsyncadd [#allocation3], 4294967232 }
  0x58   :  { %1465 = dma.done.wait [#allocation6], 2560  }
  0x59   :  { %1466 = vsyncadd [#allocation6], 4294964736 }
  0x5a   :  { %1467 = dma.done.wait [#allocation9], 9216  }
  0x5b   :  { %1468 = vsyncadd [#allocation9], 4294958080  ;;  %v1482_v0 = vmov 0.0   ;;  %vm1483_vm0 = vmmov 0   ;;  %v1215_v1 = vld [vmem:[#allocation5] sm:$0xff]   ;;  %v1216_v2 = vld [vmem:[#allocation5 + $0x8] sm:$0xff]  }
  0x5c   :  { %1168 = vmatprep.subr.bf16.mxu0 %v1482_v0  ;;  %1176 = vmatprep.mubr.msk.bf16.mxu0 %vm1483_vm0, %v1482_v0  ;;  %v1219_v3 = vld [vmem:[#allocation7 + $0x4] ss:$8 sps:$4 sm:$0xff]   ;;  %v1221_v4 = vld [vmem:[#allocation7] ss:$8 sps:$4 sm:$0xff]   ;;  %v1217_v5 = vld [vmem:[#allocation5 + $0x10] sm:$0xff]   ;;  %vm131_vm1 = vcmask 523264  }
  0x5d   :  { %1169 = vmatpush3.bf16.msra.mxu0 %v1215_v1  ;;  %v1222_v6 = vld [vmem:[#allocation7 + $0x14] ss:$8 sps:$4 sm:$0xff]   ;;  %273 = vmatprep.subr.bf16.mxu1 %v1219_v3  ;;  %v1224_v7 = vld [vmem:[#allocation7 + $0x10] ss:$8 sps:$4 sm:$0xff]   ;;  %v1225_v8 = vld [vmem:[#allocation7 + $0x24] ss:$8 sps:$4 sm:$0xff]  }
  0x5e   :  { %1170 = vmatprep.subr.bf16.mxu0 %v1482_v0  ;;  %274 = vmatpush1.bf16.msra.mxu1 %v1221_v4  ;;  %v1218_v9 = vld [vmem:[#allocation5 + $0x18] sm:$0xff]   ;;  %v1227_v10 = vld [vmem:[#allocation7 + $0x20] ss:$8 sps:$4 sm:$0xff]   ;;  %v1231_v14 = vld [vmem:[#allocation7 + $0x44] ss:$8 sps:$4 sm:$0xff]   ;;  %v1484_v22 = vmov 0  }
  0x5f   :  { %275 = vmatprep.subr.bf16.mxu1 %v1222_v6  ;;  %v91_v11 = vld [vmem:[#allocation2] sm:$0xf]  ;;  %v1230_v13 = vld [vmem:[#allocation7 + $0x30] ss:$8 sps:$4 sm:$0xff]   ;;  %v1233_v15 = vld [vmem:[#allocation7 + $0x40] ss:$8 sps:$4 sm:$0xff]   ;;  %305 = vmatprep.mubr.bf16.mxu1 %v1484_v22 }
  0x60   :  { %v1228_v12 = vld [vmem:[#allocation7 + $0x34] ss:$8 sps:$4 sm:$0xff]   ;;  %v1236_v17 = vld [vmem:[#allocation7 + $0x50] ss:$8 sps:$4 sm:$0xff]   ;;  %v1237_v18 = vld [vmem:[#allocation7 + $0x64] ss:$8 sps:$4 sm:$0xff]  }
  0x61   :  { %1171 = vmatpush3.bf16.msra.mxu0 %v1216_v2  ;;  %v1234_v16 = vld [vmem:[#allocation7 + $0x54] ss:$8 sps:$4 sm:$0xff]   ;;  %v1239_v19 = vld [vmem:[#allocation7 + $0x60] ss:$8 sps:$4 sm:$0xff]   ;;  %v1242_v21 = vld [vmem:[#allocation7 + $0x70] ss:$8 sps:$4 sm:$0xff]  }
  0x62   :  { %1172 = vmatprep.subr.bf16.mxu0 %v1482_v0  ;;  %276 = vmatpush1.bf16.msra.mxu1 %v1224_v7  ;;  %v1240_v20 = vld [vmem:[#allocation7 + $0x74] ss:$8 sps:$4 sm:$0xff]   ;;  %v1243_v23 = vld [vmem:[#allocation8] ss:$12 sps:$4 sm:$0xff]   ;;  %v1245_v24 = vld [vmem:[#allocation8 + $0x4] ss:$12 sps:$4 sm:$0xff]  }
  0x63   :  { %277 = vmatprep.subr.bf16.mxu1 %v1225_v8  ;;  %v1248_v25 = vld [vmem:[#allocation8 + $0x1c] ss:$12 sps:$4 sm:$0xff]   ;;  %v1246_v26 = vld [vmem:[#allocation8 + $0x18] ss:$12 sps:$4 sm:$0xff]   ;;  %v1251_v27 = vld [vmem:[#allocation8 + $0x34] ss:$12 sps:$4 sm:$0xff]  }
  0x64   :  { %v1270_v28 = vld [vmem:[#allocation8 + $0xc8] ss:$12 sps:$4 sm:$0xff]   ;;  %v1249_v29 = vld [vmem:[#allocation8 + $0x30] ss:$12 sps:$4 sm:$0xff]   ;;  %v1254_v30 = vld [vmem:[#allocation8 + $0x4c] ss:$12 sps:$4 sm:$0xff]  }
  0x65   :  { %1173 = vmatpush3.bf16.msra.mxu0 %v1217_v5  ;;  %v1252_v31 = vld [vmem:[#allocation8 + $0x48] ss:$12 sps:$4 sm:$0xff]   ;;  %v1257_v32 = vld [vmem:[#allocation8 + $0x64] ss:$12 sps:$4 sm:$0xff]   ;;  %v1255_v33 = vld [vmem:[#allocation8 + $0x60] ss:$12 sps:$4 sm:$0xff]  }
  0x66   :  { %1174 = vmatprep.subr.bf16.mxu0 %v1482_v0  ;;  %278 = vmatpush1.bf16.msra.mxu1 %v1227_v10  ;;  %v1260_v34 = vld [vmem:[#allocation8 + $0x7c] ss:$12 sps:$4 sm:$0xff]   ;;  %v1258_v35 = vld [vmem:[#allocation8 + $0x78] ss:$12 sps:$4 sm:$0xff]   ;;  %v1263_v36 = vld [vmem:[#allocation8 + $0x94] ss:$12 sps:$4 sm:$0xff]  }
  0x67   :  { %279 = vmatprep.subr.bf16.mxu1 %v1228_v12  ;;  %v1261_v37 = vld [vmem:[#allocation8 + $0x90] ss:$12 sps:$4 sm:$0xff]   ;;  %v1266_v38 = vld [vmem:[#allocation8 + $0xac] ss:$12 sps:$4 sm:$0xff]   ;;  %v1264_v39 = vld [vmem:[#allocation8 + $0xa8] ss:$12 sps:$4 sm:$0xff]  }
  0x68   :  { %v1269_v40 = vld [vmem:[#allocation8 + $0xc4] ss:$12 sps:$4 sm:$0xff]   ;;  %v1267_v41 = vld [vmem:[#allocation8 + $0xc0] ss:$12 sps:$4 sm:$0xff]   ;;  %v1274_v42 = vld [vmem:[#allocation8 + $0xdc] ss:$12 sps:$4 sm:$0xff]  }
  0x69   :  { %1175 = vmatpush3.bf16.msra.mxu0 %v1218_v9  ;;  %v1272_v43 = vld [vmem:[#allocation8 + $0xd8] ss:$12 sps:$4 sm:$0xff]   ;;  %v1279_v44 = vld [vmem:[#allocation8 + $0xf4] ss:$12 sps:$4 sm:$0xff]   ;;  %v1277_v45 = vld [vmem:[#allocation8 + $0xf0] ss:$12 sps:$4 sm:$0xff]  }
  0x6a   :  { %280 = vmatpush1.bf16.msra.mxu1 %v1230_v13  ;;  %638 = vmatprep.subr.bf16.mxu0 %v1245_v24  ;;  %v1284_v46 = vld [vmem:[#allocation8 + $0x10c] ss:$12 sps:$4 sm:$0xff]   ;;  %v1282_v47 = vld [vmem:[#allocation8 + $0x108] ss:$12 sps:$4 sm:$0xff]   ;;  %v1289_v48 = vld [vmem:[#allocation8 + $0x124] ss:$12 sps:$4 sm:$0xff]  }
  0x6b   :  { %281 = vmatprep.subr.bf16.mxu1 %v1231_v14  ;;  %v1287_v49 = vld [vmem:[#allocation8 + $0x120] ss:$12 sps:$4 sm:$0xff]   ;;  %v1294_v50 = vld [vmem:[#allocation8 + $0x13c] ss:$12 sps:$4 sm:$0xff]   ;;  %v1292_v51 = vld [vmem:[#allocation8 + $0x138] ss:$12 sps:$4 sm:$0xff]  }
  0x6c   :  { %1177 = vmatmul.mubr.msk.bf16.vlgmr.msra.gmra.mrb[0].mxu0 %vm131_vm1, %v91_v11  ;;  %v1299_v52 = vld [vmem:[#allocation8 + $0x154] ss:$12 sps:$4 sm:$0xff]   ;;  %v1297_v53 = vld [vmem:[#allocation8 + $0x150] ss:$12 sps:$4 sm:$0xff]   ;;  %v1280_v2 = vld [vmem:[#allocation8 + $0xf8] ss:$12 sps:$4 sm:$0xff]  }
  0x6d   :  { %639 = vmatpush1.bf16.msra.mxu0 %v1243_v23  ;;  %v1016_v54 = vld [vmem:[%s1626_s1] ss:$0 sm:$0xff]  ;;  %v1271_v61 = vld [vmem:[#allocation8 + $0x8] ss:$12 sps:$4 sm:$0xff]   ;;  %v1275_v63 = vld [vmem:[#allocation8 + $0xe0] ss:$12 sps:$4 sm:$0xff]  }
  0x6e   :  { %282 = vmatpush1.bf16.msra.mxu1 %v1233_v15  ;;  %640 = vmatprep.subr.bf16.mxu0 %v1248_v25  ;;  %v1276_v1 = vld [vmem:[#allocation8 + $0x20] ss:$12 sps:$4 sm:$0xff]   ;;  %v1281_v3 = vld [vmem:[#allocation8 + $0x38] ss:$12 sps:$4 sm:$0xff]   ;;  %v1285_v4 = vld [vmem:[#allocation8 + $0x110] ss:$12 sps:$4 sm:$0xff]  }
  0x6f   :  { %283 = vmatprep.subr.bf16.mxu1 %v1234_v16  ;;  %v1286_v5 = vld [vmem:[#allocation8 + $0x50] ss:$12 sps:$4 sm:$0xff]   ;;  %v1290_v6 = vld [vmem:[#allocation8 + $0x128] ss:$12 sps:$4 sm:$0xff]   ;;  %v1295_v8 = vld [vmem:[#allocation8 + $0x140] ss:$12 sps:$4 sm:$0xff]  }
  0x70   :  { %v1291_v7 = vld [vmem:[#allocation8 + $0x68] ss:$12 sps:$4 sm:$0xff]   ;;  %v1296_v9 = vld [vmem:[#allocation8 + $0x80] ss:$12 sps:$4 sm:$0xff]   ;;  %v1300_v10 = vld [vmem:[#allocation8 + $0x158] ss:$12 sps:$4 sm:$0xff]  }
  0x71   :  { %641 = vmatpush1.bf16.msra.mxu0 %v1246_v26  ;;  %v1301_v11 = vld [vmem:[#allocation8 + $0x98] ss:$12 sps:$4 sm:$0xff]   ;;  %v1305_v13 = vld [vmem:[#allocation8 + $0x170] ss:$12 sps:$4 sm:$0xff]   ;;  %v1302_v14 = vld [vmem:[#allocation8 + $0x168] ss:$12 sps:$4 sm:$0xff]  }
  0x72   :  { %284 = vmatpush1.bf16.msra.mxu1 %v1236_v17  ;;  %642 = vmatprep.subr.bf16.mxu0 %v1251_v27  ;;  %v1304_v12 = vld [vmem:[#allocation8 + $0x16c] ss:$12 sps:$4 sm:$0xff]   ;;  %v1306_v15 = vld [vmem:[#allocation8 + $0xb0] ss:$12 sps:$4 sm:$0xff]   ;;  %v1307_v16 = vld [vmem:[#allocation10 + $0x40] sm:$0xff]   ;;  %s1485_s1 = smov [#allocation11]  }
  0x73   :  { %285 = vmatprep.subr.bf16.mxu1 %v1237_v18  ;;  %v1308_v24 = vld [vmem:[#allocation10] sm:$0xff]   ;;  %v1310_v27 = vld [vmem:[#allocation10 + $0x48] sm:$0xff]   ;;  %s1005_s8 = sshll.u32 %s1485_s1, 4  ;;  %s1006_s8 = int_to_ptr.vmem [resolvable:$true] %s1005_s8 }
  0x74   :  { %v1309_v25 = vld [vmem:[#allocation10 + $0x80] sm:$0xff]   ;;  %s1441_s12 = scalar_lea.vmem %s1006_s8, 64  ;;  %p1446_p13 = scmp.lt.s32.totalorder %s1006_s8, %s1006_s8 }
  0x75   :  { %643 = vmatpush1.bf16.msra.mxu0 %v1249_v29  ;;  %v1312_v29 = vld [vmem:[#allocation10 + $0x88] sm:$0xff]   ;;  %p1442_p12 = scmp.ne.s32.totalorder %s1006_s8, %s1441_s12  ;;  %p1447_p0 = scmp.lt.s32.totalorder %s1441_s12, %s1441_s12 }
  0x76   :  { %286 = vmatpush1.bf16.msra.mxu1 %v1239_v19  ;;  %644 = vmatprep.subr.bf16.mxu0 %v1254_v30  ;;  %v1313_v30 = vld [vmem:[#allocation10 + $0x50] sm:$0xff]  }
  0x77   :  { %287 = vmatprep.subr.bf16.mxu1 %v1240_v20  ;;  %p1448_p1 = por %p1447_p0, %p1446_p13 }
  0x79   :  { %645 = vmatpush1.bf16.msra.mxu0 %v1252_v31  ;;  %v1314_v31 = vld [vmem:[#allocation10 + $0x10] sm:$0xff]   ;;  %p1449_p2 = pnand %p1448_p1, %p1442_p12 }
  0x7a   :  { %288 = vmatpush1.bf16.msra.mxu1 %v1242_v21  ;;  %646 = vmatprep.subr.bf16.mxu0 %v1257_v32  ;;  %v1315_v32 = vld [vmem:[#allocation10 + $0x90] sm:$0xff]  }
  0x7b   :  { %1115 = vmatprep.subr.bf16.mxu1 %v1270_v28  ;;  %v1311_v28 = vld [vmem:[#allocation10 + $0x8] sm:$0xff]  }
  0x7d   :  { %647 = vmatpush1.bf16.msra.mxu0 %v1255_v33  ;;  %v1316_v33 = vld [vmem:[#allocation10 + $0x58] sm:$0xff]  }
  0x7e   :  { %648 = vmatprep.subr.bf16.mxu0 %v1260_v34  ;;  %v1317_v34 = vld [vmem:[#allocation10 + $0x18] sm:$0xff]  }
  0x81   :  { %649 = vmatpush1.bf16.msra.mxu0 %v1258_v35  ;;  %v1318_v35 = vld [vmem:[#allocation10 + $0x98] sm:$0xff]  }
  0x82   :  { %650 = vmatprep.subr.bf16.mxu0 %v1263_v36  ;;  %v1319_v36 = vld [vmem:[#allocation10 + $0x60] sm:$0xff]  }
  0x85   :  { %651 = vmatpush1.bf16.msra.mxu0 %v1261_v37  ;;  %v1320_v37 = vld [vmem:[#allocation10 + $0x20] sm:$0xff]  }
  0x86   :  { %652 = vmatprep.subr.bf16.mxu0 %v1266_v38  ;;  %v1321_v38 = vld [vmem:[#allocation10 + $0xa0] sm:$0xff]  }
  0x89   :  { %653 = vmatpush1.bf16.msra.mxu0 %v1264_v39  ;;  %v1322_v39 = vld [vmem:[#allocation10 + $0x68] sm:$0xff]  }
  0x8a   :  { %654 = vmatprep.subr.bf16.mxu0 %v1269_v40  ;;  %v1323_v40 = vld [vmem:[#allocation10 + $0x28] sm:$0xff]  }
  0x8d   :  { %655 = vmatpush1.bf16.msra.mxu0 %v1267_v41  ;;  %v1324_v41 = vld [vmem:[#allocation10 + $0xa8] sm:$0xff]  }
  0x8e   :  { %656 = vmatprep.subr.bf16.mxu0 %v1274_v42  ;;  %v1325_v42 = vld [vmem:[#allocation10 + $0x70] sm:$0xff]  }
  0x91   :  { %657 = vmatpush1.bf16.msra.mxu0 %v1272_v43  ;;  %v1326_v43 = vld [vmem:[#allocation10 + $0x30] sm:$0xff]  }
  0x92   :  { %658 = vmatprep.subr.bf16.mxu0 %v1279_v44  ;;  %v1327_v44 = vld [vmem:[#allocation10 + $0xb0] sm:$0xff]  }
  0x95   :  { %659 = vmatpush1.bf16.msra.mxu0 %v1277_v45  ;;  %v1328_v45 = vld [vmem:[#allocation10 + $0x78] sm:$0xff]  }
  0x96   :  { %660 = vmatprep.subr.bf16.mxu0 %v1284_v46  ;;  %v1329_v46 = vld [vmem:[#allocation10 + $0x38] sm:$0xff]  }
  0x99   :  { %661 = vmatpush1.bf16.msra.mxu0 %v1282_v47  ;;  %v1330_v47 = vld [vmem:[#allocation10 + $0xb8] sm:$0xff]  }
  0x9a   :  { %662 = vmatprep.subr.bf16.mxu0 %v1289_v48 }
  0x9d   :  { %663 = vmatpush1.bf16.msra.mxu0 %v1287_v49 }
  0x9e   :  { %664 = vmatprep.subr.bf16.mxu0 %v1294_v50 }
  0xa1   :  { %665 = vmatpush1.bf16.msra.mxu0 %v1292_v51 }
  0xa2   :  { %666 = vmatprep.subr.bf16.mxu0 %v1299_v52 }
  0xa5   :  { %667 = vmatpush1.bf16.msra.mxu0 %v1297_v53 }
  0xa6   :  { %668 = vmatprep.subr.bf16.mxu0 %v1304_v12 }
  0xa9   :  { %669 = vmatpush1.bf16.msra.mxu0 %v1302_v14 }
  0xaa   :  { %1180 = vmatprep.subr.bf16.mxu0 %v1482_v0 }
 0x13f   :  { %v169_v55 = vpop.f32.mrb[0].mxu0 }
 0x140   :  { %v170_v56 = vadd.f32 %v1016_v54, %v169_v55  ;;  %v1178_v57 = vpop.f32.mrb[1].mxu0 }
 0x141   :  { %v172_v58 = vpop.f32.mrb[2].mxu0 }
 0x142   :  { %v175_v59 = vmax.f32 %v170_v56, 0.0  ;;  %v1179_v60 = vpop.f32.mrb[3].mxu0 }
 0x144   :  { %v176_v62 = vpack.c.bf16 %v175_v59, %v175_v59 }
 0x146   :  { %306 = vmatmul.mubr.bf16.vlgmr.msra.gmra.mrb[0].mxu1 %v176_v62 }
 0x147   :  { %1116 = vmatpush3.bf16.msra.mxu1 %v1271_v61 }
 0x148   :  { %1117 = vmatprep.subr.bf16.mxu1 %v1275_v63 }
 0x14b   :  { %1118 = vmatpush3.bf16.msra.mxu1 %v1276_v1 }
 0x14c   :  { %1119 = vmatprep.subr.bf16.mxu1 %v1280_v2 }
 0x14f   :  { %1120 = vmatpush3.bf16.msra.mxu1 %v1281_v3 }
 0x150   :  { %1121 = vmatprep.subr.bf16.mxu1 %v1285_v4 }
 0x153   :  { %1122 = vmatpush3.bf16.msra.mxu1 %v1286_v5 }
 0x154   :  { %1123 = vmatprep.subr.bf16.mxu1 %v1290_v6 }
 0x157   :  { %1124 = vmatpush3.bf16.msra.mxu1 %v1291_v7 }
 0x158   :  { %1125 = vmatprep.subr.bf16.mxu1 %v1295_v8 }
 0x15b   :  { %1126 = vmatpush3.bf16.msra.mxu1 %v1296_v9 }
 0x15c   :  { %1127 = vmatprep.subr.bf16.mxu1 %v1300_v10 }
 0x15f   :  { %1128 = vmatpush3.bf16.msra.mxu1 %v1301_v11 }
 0x160   :  { %1129 = vmatprep.subr.bf16.mxu1 %v1305_v13 }
 0x163   :  { %1130 = vmatpush3.bf16.msra.mxu1 %v1306_v15 }
 0x164   :  { %1137 = vmatprep.subr.bf16.mxu1 %v1307_v16 }
 0x219   :  { %v307_v17 = vpop.f32.mrb[0].mxu1 }
 0x21a   :  { %v314_v18 = vmax.f32 %v307_v17, 0.0  ;;  %v309_v19 = vpop.f32.mrb[1].mxu1 }
 0x21b   :  { %v315_v20 = vmax.f32 %v309_v19, 0.0  ;;  %v311_v21 = vpop.f32.mrb[2].mxu1 }
 0x21c   :  { %v312_v22 = vpop.f32.mrb[3].mxu1  ;;  %v316_v26 = vpack.c.bf16 %v314_v18, %v314_v18 }
 0x21d   :  { %v317_v23 = vpack.c.bf16 %v315_v20, %v315_v20 }
 0x21f   :  { %670 = vmatprep.mubr.bf16.mxu0 %v317_v23  ;;  %711 = vmatprep.mubr.bf16.mxu1 %v317_v23 }
 0x220   :  { %671 = vmatmul.mubr.bf16.vlgmr.msra.gmra.mrb[4].mxu0 %v316_v26  ;;  %712 = vmatmul.mubr.bf16.vlgmr.msra.gmra.mrb[4].mxu1 %v316_v26 }
 0x221   :  { %1138 = vmatpush3.bf16.msra.mxu1 %v1308_v24  ;;  %1181 = vmatpush3.bf16.msra.mxu0 %v1309_v25 }
 0x222   :  { %1139 = vmatprep.subr.bf16.mxu1 %v1310_v27  ;;  %1182 = vmatprep.subr.bf16.mxu0 %v1482_v0 }
 0x223   :  { %1196 = vmatprep.mubr.msk.bf16.mxu0 %vm1483_vm0, %v1482_v0 }
 0x225   :  { %1140 = vmatpush3.bf16.msra.mxu1 %v1311_v28  ;;  %1183 = vmatpush3.bf16.msra.mxu0 %v1312_v29 }
 0x226   :  { %1141 = vmatprep.subr.bf16.mxu1 %v1313_v30  ;;  %1184 = vmatprep.subr.bf16.mxu0 %v1482_v0 }
 0x229   :  { %1142 = vmatpush3.bf16.msra.mxu1 %v1314_v31  ;;  %1185 = vmatpush3.bf16.msra.mxu0 %v1315_v32 }
 0x22a   :  { %1143 = vmatprep.subr.bf16.mxu1 %v1316_v33  ;;  %1186 = vmatprep.subr.bf16.mxu0 %v1482_v0 }
 0x22d   :  { %1144 = vmatpush3.bf16.msra.mxu1 %v1317_v34  ;;  %1187 = vmatpush3.bf16.msra.mxu0 %v1318_v35 }
 0x22e   :  { %1145 = vmatprep.subr.bf16.mxu1 %v1319_v36  ;;  %1188 = vmatprep.subr.bf16.mxu0 %v1482_v0 }
 0x231   :  { %1146 = vmatpush3.bf16.msra.mxu1 %v1320_v37  ;;  %1189 = vmatpush3.bf16.msra.mxu0 %v1321_v38 }
 0x232   :  { %1147 = vmatprep.subr.bf16.mxu1 %v1322_v39  ;;  %1190 = vmatprep.subr.bf16.mxu0 %v1482_v0 }
 0x235   :  { %1148 = vmatpush3.bf16.msra.mxu1 %v1323_v40  ;;  %1191 = vmatpush3.bf16.msra.mxu0 %v1324_v41 }
 0x236   :  { %1149 = vmatprep.subr.bf16.mxu1 %v1325_v42  ;;  %1192 = vmatprep.subr.bf16.mxu0 %v1482_v0 }
 0x239   :  { %1150 = vmatpush3.bf16.msra.mxu1 %v1326_v43  ;;  %1193 = vmatpush3.bf16.msra.mxu0 %v1327_v44 }
 0x23a   :  { %1194 = vmatprep.subr.bf16.mxu0 %v1482_v0  ;;  %1151 = vmatprep.subr.bf16.mxu1 %v1328_v45 }
 0x23d   :  { %1152 = vmatpush3.bf16.msra.mxu1 %v1329_v46  ;;  %1195 = vmatpush3.bf16.msra.mxu0 %v1330_v47 }
 0x2f3   :  { %v672_v48 = vpop.f32.mrb[4].mxu0  ;;  %v1131_v49 = vpop.f32.mrb[4].mxu1 }
 0x2f4   :  { %v719_v50 = vmax.f32 %v672_v48, 0.0  ;;  %v674_v51 = vpop.f32.mrb[5].mxu0  ;;  %v1132_v52 = vpop.f32.mrb[5].mxu1 }
 0x2f5   :  { %v720_v53 = vmax.f32 %v674_v51, 0.0  ;;  %v1133_v54 = vadd.f32 %v1132_v52, %v1131_v49  ;;  %v676_v55 = vpop.f32.mrb[6].mxu0  ;;  %v1134_v56 = vpop.f32.mrb[6].mxu1 }
 0x2f6   :  { %v677_v57 = vpop.f32.mrb[7].mxu0  ;;  %v1135_v58 = vpop.f32.mrb[7].mxu1  ;;  %v722_v61 = vpack.c.bf16 %v719_v50, %v719_v50 }
 0x2f7   :  { %v723_v59 = vpack.c.bf16 %v720_v53, %v720_v53  ;;  %v721_v60 = vmax.f32 %v1133_v54, 0.0 }
 0x2f9   :  { %v724_v62 = vpack.c.bf16 %v721_v60, %v721_v60  ;;  %949 = vmatprep.mubr.bf16.mxu1 %v723_v59 }
 0x2fa   :  { %950 = vmatmul.mubr.bf16.vlgmr.msra.gmra.mrb[8].mxu1 %v722_v61 }
 0x2fb   :  { %1197 = vmatmul.mubr.bf16.vlgmr.msra.gmra.mrb[8].mxu0 %v724_v62 }
 0x3cd   :  { %v1153_v0 = vpop.f32.mrb[8].mxu1 }
 0x3ce   :  { %v1154_v63 = vpop.f32.mrb[9].mxu1  ;;  %v991_v1 = vpop.f32.mrb[8].mxu0 }
 0x3cf   :  { %v1155_v2 = vadd.f32 %v1154_v63, %v1153_v0  ;;  %v1156_v3 = vpop.f32.mrb[10].mxu1  ;;  %v1198_v4 = vpop.f32.mrb[9].mxu0 }
 0x3d0   :  { %v1157_v5 = vpop.f32.mrb[11].mxu1  ;;  %v994_v6 = vpop.f32.mrb[10].mxu0 }
 0x3d1   :  { %v992_v7 = vadd.f32 %v1155_v2, %v991_v1  ;;  %v1199_v8 = vpop.f32.mrb[11].mxu0 }
 0x3d3   :  { %v997_v9 = vpack.c.bf16 %v992_v7, %v992_v7 }
 0x3d5   :  { %998 = vst [vmem:[#allocation11] sm:$0xf] %v997_v9 }
 0x3d6   :  { %1452 = shalt.err (!%p1449_p2)
}
 0x3d7   :  { %s1453_s16 = scalar_lea.hbm %s1631_s6, 64 }
 0x3d8   :  { %p1454_p3 = scmp.ne.s32.totalorder %s1631_s6, %s1453_s16  ;;  %p1457_p4 = scmp.lt.u32.totalorder %s1453_s16, %s1631_s6 }
 0x3da   :  { %p1459_p5 = pnand %p1457_p4, %p1454_p3 }
 0x3dc   :  { %1462 = shalt.err (!%p1459_p5)
}
 0x3dd   :  { %1008 = dma.vmem_to_hbm [thread:$0]  %s1006_s8, 64, %s1631_s6, [#allocation4]  }
 0x3de   :  { %1469 = dma.done.wait [#allocation4], 64  }
 0x3df   :  { %1470 = vsyncadd [#allocation4], 4294967232 }
 0x3e0   :  { %1012 = vsyncpa [#allocation3], 1 }
 0x3e1   :  { %1013 = vsyncpa [#allocation6], 1 }
 0x3e2   :  { %1014 = vsyncpa [#allocation9], 1 }
 0x3e3   :  { %1015 = vsyncpa [#allocation4], 1 }

</bundles_post_ra>
